<compile_context>
chip_gen: v7x
topology: tpu7x:2x2x1
jax: 0.10.0
libtpu: 0.0.40
codegen_flags: <defaults>
</compile_context>

<pallas_src>
import functools

import jax
import jax.numpy as jnp
from jax.experimental import pallas as pl
from jax.experimental.pallas import tpu as pltpu

LANE = 128                # hidden/output lane padding -> unmasked lane-dense stores
SUBLANE = 8               # batch-tile rounding -> sublane-dense stores
MAX_BATCH_BLOCK = 4096    # rows per grid step once the batch gets big (sweepable)


def _round_up(n, m):
    return ((n + m - 1) // m) * m


def encoder_kernel(x_ref, w1_ref, b1_ref, w2_ref, b2_ref, o_ref):
    # fc1 + ReLU   (bf16 operands on the MXU, f32 accumulation, f32 epilogue -> v5e-safe)
    x = x_ref[...].astype(w1_ref.dtype)                     # no-op when x is already bf16
    h = jnp.dot(x, w1_ref[...], preferred_element_type=jnp.float32)
    h = jnp.maximum(h + b1_ref[...], 0.0)                   # (TB, Hp) + (1, Hp)
    # fc2 + ReLU
    o = jnp.dot(h.astype(w2_ref.dtype), w2_ref[...],
                preferred_element_type=jnp.float32)
    o = jnp.maximum(o + b2_ref[...], 0.0)
    o_ref[...] = o.astype(o_ref.dtype)                      # bf16 store: half the writeback


def prepare_encoder_params(w1, b1, w2, b2, compute_dtype=jnp.bfloat16):
    """One-time conversion of PyTorch nn.Linear params to kernel layout.

    w1: (H, D_in), b1: (H,), w2: (H, H), b2: (H,)   (PyTorch convention).
    Returns (w1t, b1p, w2t, b2p): weights transposed to (in, out), hidden dim zero-padded
    to a multiple of 128 (lane-dense), weights in compute_dtype, biases as f32 rows (1, Hp).
    Zero padding keeps the math exact (padded lanes stay 0 through both layers).
    """
    H, D = w1.shape
    Hp = _round_up(H, LANE)
    w1t = jnp.zeros((D, Hp), compute_dtype).at[:, :H].set(w1.T.astype(compute_dtype))
    w2t = jnp.zeros((Hp, Hp), compute_dtype).at[:H, :H].set(w2.T.astype(compute_dtype))
    b1p = jnp.zeros((1, Hp), jnp.float32).at[:, :H].set(b1.astype(jnp.float32))
    b2p = jnp.zeros((1, Hp), jnp.float32).at[:, :H].set(b2.astype(jnp.float32))
    return w1t, b1p, w2t, b2p


@functools.partial(jax.jit, static_argnames=("hidden_dim", "trim"))
def encoder_forward(x, w1t, b1p, w2t, b2p, *, hidden_dim, trim=True):
    """x: (B, input_dim) (bf16 preferred); params from prepare_encoder_params.

    Returns (B, hidden_dim) bf16 if trim=True (module semantics), else the padded
    (B, Hp) bf16 slab so fused consumers avoid an extra lane-slice pass over HBM.
    """
    B, D = x.shape
    Hp = w1t.shape[1]

    # Batch tiling: large VMEM-friendly tiles; weights stay resident across steps.
    #  * B <= 64:                one sublane-dense tile.
    #  * 64 < B <= 2*MAX_BLOCK:  exactly 2 tiles so both v7x TensorCores work.
    #  * larger:                 MAX_BATCH_BLOCK rows per step.
    if B <= 64:
        TB = _round_up(B, SUBLANE)
    elif B <= 2 * MAX_BATCH_BLOCK:
        TB = _round_up(-(-B // 2), SUBLANE)
    else:
        TB = MAX_BATCH_BLOCK
    grid = pl.cdiv(B, TB)   # no jnp.pad: ragged last tile's OOB rows are dropped on store

    out = pl.pallas_call(
        encoder_kernel,
        out_shape=jax.ShapeDtypeStruct((B, Hp), jnp.bfloat16),
        grid=(grid,),
        in_specs=[
            pl.BlockSpec((TB, D), lambda i: (i, 0)),      # x: streamed per batch tile
            pl.BlockSpec((D, Hp), lambda i: (0, 0)),      # w1t: VMEM-resident
            pl.BlockSpec((1, Hp), lambda i: (0, 0)),      # b1
            pl.BlockSpec((Hp, Hp), lambda i: (0, 0)),     # w2t: VMEM-resident
            pl.BlockSpec((1, Hp), lambda i: (0, 0)),      # b2
        ],
        out_specs=pl.BlockSpec((TB, Hp), lambda i: (i, 0)),
        compiler_params=pltpu.CompilerParams(
            dimension_semantics=("parallel",),            # shard batch tiles across TCs (v7x)
            vmem_limit_bytes=32 * 1024 * 1024,            # explicit; safe on v5e/v6e/v7x
        ),
    )(x, w1t, b1p, w2t, b2p)

    if trim:
        return out[:, :hidden_dim]   # only when the caller needs exact (B, H); else skip
    return out


def encoder_ref(x, w1, b1, w2, b2):
    h = jnp.maximum(x @ w1.T + b1, 0.0)
    return jnp.maximum(h @ w2.T + b2, 0.0)


if __name__ == "__main__":
    input_dim = 64
    hidden_dim = 32
    batch = 8

    key = jax.random.PRNGKey(0)
    kx, k1, k2, k3, k4 = jax.random.split(key, 5)

    # Deterministic init mimicking PyTorch nn.Linear: U(-1/sqrt(fan_in), 1/sqrt(fan_in))
    bnd1 = 1.0 / (input_dim ** 0.5)
    bnd2 = 1.0 / (hidden_dim ** 0.5)
    w1 = jax.random.uniform(k1, (hidden_dim, input_dim), jnp.float32, -bnd1, bnd1)
    b1 = jax.random.uniform(k2, (hidden_dim,), jnp.float32, -bnd1, bnd1)
    w2 = jax.random.uniform(k3, (hidden_dim, hidden_dim), jnp.float32, -bnd2, bnd2)
    b2 = jax.random.uniform(k4, (hidden_dim,), jnp.float32, -bnd2, bnd2)

    x_f32 = jax.random.normal(kx, (batch, input_dim), jnp.float32)
    x = x_f32.astype(jnp.bfloat16)   # cast once upstream: halves the x DMA into the kernel

    params = prepare_encoder_params(w1, b1, w2, b2)      # one-time layout / pad / bf16
    out = encoder_forward(x, *params, hidden_dim=hidden_dim, trim=True)
    out = jax.block_until_ready(out)

    ref = encoder_ref(x_f32, w1, b1, w2, b2)
    assert out.shape == (batch, hidden_dim)
    # bf16 x / weights / output with f32 MXU accumulation -> relaxed tolerance.
    assert jnp.allclose(out.astype(jnp.float32), ref, atol=3e-2, rtol=3e-2), \
        "mismatch vs reference"

    print("KERNEL_OK")
</pallas_src>

<mosaic_0001>
module attributes {stable_mosaic.version = 11 : i64} {
  func.func @encoder_kernel(%arg0: i32, %arg1: memref<8x64xbf16, #tpu.memory_space<vmem>>, %arg2: memref<64x128xbf16, #tpu.memory_space<vmem>>, %arg3: memref<1x128xf32, #tpu.memory_space<vmem>>, %arg4: memref<128x128xbf16, #tpu.memory_space<vmem>>, %arg5: memref<1x128xf32, #tpu.memory_space<vmem>>, %arg6: memref<8x128xbf16, #tpu.memory_space<vmem>>) attributes {dimension_semantics = [#tpu.dimension_semantics<parallel>], iteration_bounds = array<i64: 1>, scalar_prefetch = 0 : i64, scratch_operands = 0 : i64, tpu.core_type = #tpu.core_type<tc>, window_params = [{transform_indices = @transform_0, window_bounds = array<i64: 8, 64>}, {pipeline_mode = #tpu.pipeline_mode<synchronous>, transform_indices = @transform_1, window_bounds = array<i64: 64, 128>}, {pipeline_mode = #tpu.pipeline_mode<synchronous>, transform_indices = @transform_2, window_bounds = array<i64: 1, 128>}, {pipeline_mode = #tpu.pipeline_mode<synchronous>, transform_indices = @transform_3, window_bounds = array<i64: 128, 128>}, {pipeline_mode = #tpu.pipeline_mode<synchronous>, transform_indices = @transform_4, window_bounds = array<i64: 1, 128>}, {transform_indices = @transform_5, window_bounds = array<i64: 8, 128>}]} {
    %c0 = arith.constant 0 : index
    %c0_0 = arith.constant 0 : index
    %0 = vector.load %arg1[%c0, %c0_0] : memref<8x64xbf16, #tpu.memory_space<vmem>>, vector<8x64xbf16>
    %c0_1 = arith.constant 0 : index
    %c0_2 = arith.constant 0 : index
    %1 = vector.load %arg2[%c0_1, %c0_2] : memref<64x128xbf16, #tpu.memory_space<vmem>>, vector<64x128xbf16>
    %cst = arith.constant dense<0.000000e+00> : vector<8x128xf32>
    %2 = tpu.matmul %0, %1, %cst {dimension_numbers = #tpu.dot_dimension_numbers<[1], [0], [0], [1], [0, 0, 1, 1], [], []>} : vector<8x64xbf16>, vector<64x128xbf16>, vector<8x128xf32> -> vector<8x128xf32>
    %c0_3 = arith.constant 0 : index
    %c0_4 = arith.constant 0 : index
    %3 = vector.load %arg3[%c0_3, %c0_4] : memref<1x128xf32, #tpu.memory_space<vmem>>, vector<1x128xf32>
    %4 = vector.broadcast %3 : vector<1x128xf32> to vector<8x128xf32>
    %5 = arith.addf %2, %4 : vector<8x128xf32>
    %cst_5 = arith.constant 0.000000e+00 : f32
    %6 = vector.broadcast %cst_5 : f32 to vector<8x128xf32>
    %7 = arith.maximumf %5, %6 : vector<8x128xf32>
    %8 = arith.truncf %7 : vector<8x128xf32> to vector<8x128xbf16>
    %c0_6 = arith.constant 0 : index
    %c0_7 = arith.constant 0 : index
    %9 = vector.load %arg4[%c0_6, %c0_7] : memref<128x128xbf16, #tpu.memory_space<vmem>>, vector<128x128xbf16>
    %cst_8 = arith.constant dense<0.000000e+00> : vector<8x128xf32>
    %10 = tpu.matmul %8, %9, %cst_8 {dimension_numbers = #tpu.dot_dimension_numbers<[1], [0], [0], [1], [0, 0, 1, 1], [], []>} : vector<8x128xbf16>, vector<128x128xbf16>, vector<8x128xf32> -> vector<8x128xf32>
    %c0_9 = arith.constant 0 : index
    %c0_10 = arith.constant 0 : index
    %11 = vector.load %arg5[%c0_9, %c0_10] : memref<1x128xf32, #tpu.memory_space<vmem>>, vector<1x128xf32>
    %12 = vector.broadcast %11 : vector<1x128xf32> to vector<8x128xf32>
    %13 = arith.addf %10, %12 : vector<8x128xf32>
    %cst_11 = arith.constant 0.000000e+00 : f32
    %14 = vector.broadcast %cst_11 : f32 to vector<8x128xf32>
    %15 = arith.maximumf %13, %14 : vector<8x128xf32>
    %16 = arith.truncf %15 : vector<8x128xf32> to vector<8x128xbf16>
    %c0_12 = arith.constant 0 : index
    %c0_13 = arith.constant 0 : index
    %17 = vector.load %arg6[%c0_12, %c0_13] : memref<8x128xbf16, #tpu.memory_space<vmem>>, vector<8x128xbf16>
    tpu.vector_store %arg6[%c0_12, %c0_13], %16 {strides = array<i32>} : memref<8x128xbf16, #tpu.memory_space<vmem>>, vector<8x128xbf16>,
    return
  }
  func.func @transform_0(%arg0: i32) -> (i32, i32) {
    %c0_i32 = arith.constant 0 : i32
    %c0_i32_0 = arith.constant 0 : i32
    return %arg0, %c0_i32 : i32, i32
  }
  func.func @transform_1(%arg0: i32) -> (i32, i32) {
    %c0_i32 = arith.constant 0 : i32
    %c0_i32_0 = arith.constant 0 : i32
    %c0_i32_1 = arith.constant 0 : i32
    return %c0_i32, %c0_i32_0 : i32, i32
  }
  func.func @transform_2(%arg0: i32) -> (i32, i32) {
    %c0_i32 = arith.constant 0 : i32
    %c0_i32_0 = arith.constant 0 : i32
    %c0_i32_1 = arith.constant 0 : i32
    return %c0_i32, %c0_i32_0 : i32, i32
  }
  func.func @transform_3(%arg0: i32) -> (i32, i32) {
    %c0_i32 = arith.constant 0 : i32
    %c0_i32_0 = arith.constant 0 : i32
    %c0_i32_1 = arith.constant 0 : i32
    return %c0_i32, %c0_i32_0 : i32, i32
  }
  func.func @transform_4(%arg0: i32) -> (i32, i32) {
    %c0_i32 = arith.constant 0 : i32
    %c0_i32_0 = arith.constant 0 : i32
    %c0_i32_1 = arith.constant 0 : i32
    return %c0_i32, %c0_i32_0 : i32, i32
  }
  func.func @transform_5(%arg0: i32) -> (i32, i32) {
    %c0_i32 = arith.constant 0 : i32
    %c0_i32_0 = arith.constant 0 : i32
    return %arg0, %c0_i32 : i32, i32
  }
}

</mosaic_0001>

<bundles_post_ra>
// kernel: encoder_forward.1
= control target key start
LH: loop header
LB: loop body
LE: loop exit
PB: predicated region body
PF: predicated region fallthrough
CT: control target
= control target key end

     0   :  { %10 = vsyncpa [#allocation3], 0  ;;  %s550_s0 = inlined_call_operand.hbm [shape: bf16[8,64], index: 0, kind: input, shape index: {}]   ;;  %s551_s1 = inlined_call_operand.hbm [shape: bf16[64,128], index: 1, kind: input, shape index: {}]   ;;  %s552_s2 = inlined_call_operand.vmem [shape: f32[1,128], index: 2, kind: input, shape index: {}]   ;;  %s553_s3 = inlined_call_operand.hbm [shape: bf16[128,128], index: 3, kind: input, shape index: {}]   ;;  %s554_s4 = inlined_call_operand.vmem [shape: f32[1,128], index: 4, kind: input, shape index: {}]   ;;  %s555_s5 = inlined_call_operand.hbm [shape: bf16[8,128], index: 5, kind: output, shape index: {}]  }
   0x1   :  { %11 = vsyncpa [#allocation6], 0 }
   0x2   :  { %12 = vsyncpa [#allocation4], 0  ;;  %s452_s18 = smov [#allocation5]   ;;  %s358_s22 = scalar_lea.hbm %s551_s1, 512 }
   0x3   :  { %s28_s19 = sshll.u32 %s452_s18, 4  ;;  %p359_p0 = scmp.ne.s32.totalorder %s551_s1, %s358_s22  ;;  %s29_s19 = int_to_ptr.vmem [resolvable:$true] %s28_s19 }
   0x4   :  { %p362_p1 = scmp.lt.u32.totalorder %s358_s22, %s551_s1 }
   0x6   :  { %p364_p2 = pnand %p362_p1, %p359_p0 }
   0x8   :  { %367 = shalt.err (!%p364_p2)
}
   0x9   :  { %s368_s27 = scalar_lea.vmem %s29_s19, 512  ;;  %p373_p4 = scmp.lt.s32.totalorder %s29_s19, %s29_s19 }
   0xa   :  { %p369_p3 = scmp.ne.s32.totalorder %s29_s19, %s368_s27  ;;  %p374_p5 = scmp.lt.s32.totalorder %s368_s27, %s368_s27 }
   0xc   :  { %p375_p6 = por %p374_p5, %p373_p4 }
   0xe   :  { %p376_p7 = pnand %p375_p6, %p369_p3 }
  0x10   :  { %379 = shalt.err (!%p376_p7)
}
  0x11   :  { %s453_s28 = smov 64   ;;  %s454_s29 = smov 4  }
  0x12   :  { %34 = dma.hbm_to_vmem [thread:$0]  %s551_s1, 512, %s29_s19, [#allocation6], %s453_s28, %s453_s28, %s454_s29  }
  0x13   :  { %s455_s7 = smov [#allocation2]   ;;  %s456_s9 = smov [#allocation7]  }
  0x14   :  { %s19_s8 = sshll.u32 %s455_s7, 4  ;;  %s42_s10 = sshll.u32 %s456_s9, 4  ;;  %s20_s8 = int_to_ptr.vmem [resolvable:$true] %s19_s8  ;;  %s43_s10 = int_to_ptr.vmem [resolvable:$true] %s42_s10 }
  0x15   :  { %s380_s13 = scalar_lea.hbm %s550_s0, 64 }
  0x16   :  { %p381_p8 = scmp.ne.s32.totalorder %s550_s0, %s380_s13  ;;  %p384_p9 = scmp.lt.u32.totalorder %s380_s13, %s550_s0 }
  0x18   :  { %p386_p10 = pnand %p384_p9, %p381_p8 }
  0x1a   :  { %389 = shalt.err (!%p386_p10)
}
  0x1b   :  { %s390_s1 = scalar_lea.vmem %s20_s8, 64  ;;  %p395_p12 = scmp.lt.s32.totalorder %s20_s8, %s20_s8 }
  0x1c   :  { %p391_p11 = scmp.ne.s32.totalorder %s20_s8, %s390_s1  ;;  %p396_p13 = scmp.lt.s32.totalorder %s390_s1, %s390_s1 }
  0x1e   :  { %p397_p0 = por %p396_p13, %p395_p12 }
  0x20   :  { %p398_p1 = pnand %p397_p0, %p391_p11 }
  0x22   :  { %401 = shalt.err (!%p398_p1)
}
  0x23   :  { %22 = dma.hbm_to_vmem [thread:$0]  %s550_s0, 64, %s20_s8, [#allocation3]  }
  0x24   :  { %s402_s22 = scalar_lea.hbm %s553_s3, 1024 }
  0x25   :  { %p403_p2 = scmp.ne.s32.totalorder %s553_s3, %s402_s22  ;;  %p406_p3 = scmp.lt.u32.totalorder %s402_s22, %s553_s3 }
  0x27   :  { %p408_p4 = pnand %p406_p3, %p403_p2 }
  0x29   :  { %411 = shalt.err (!%p408_p4)
}
  0x2a   :  { %s412_s27 = scalar_lea.vmem %s43_s10, 1024  ;;  %p417_p6 = scmp.lt.s32.totalorder %s43_s10, %s43_s10 }
  0x2b   :  { %p413_p5 = scmp.ne.s32.totalorder %s43_s10, %s412_s27  ;;  %p418_p7 = scmp.lt.s32.totalorder %s412_s27, %s412_s27 }
  0x2d   :  { %p419_p8 = por %p418_p7, %p417_p6 }
  0x2f   :  { %p420_p9 = pnand %p419_p8, %p413_p5 }
  0x31   :  { %423 = shalt.err (!%p420_p9)
}
  0x32   :  { %48 = dma.hbm_to_vmem [thread:$0]  %s553_s3, 1024, %s43_s10, [#allocation6], %s453_s28, %s453_s28, %s454_s29  }
  0x33   :  { %446 = dma.done.wait [#allocation3], 64  }
  0x34   :  { %447 = vsyncadd [#allocation3], 4294967232 }
  0x35   :  { %448 = dma.done.wait [#allocation6], 1536  }
  0x36   :  { %449 = vsyncadd [#allocation6], 4294965760  ;;  %v457_v0 = vmov 0.0   ;;  %vm458_vm0 = vmmov 0   ;;  %v346_v1 = vld [vmem:[#allocation5] sm:$0xff]   ;;  %v347_v2 = vld [vmem:[#allocation5 + $0x8] sm:$0xff]  }
  0x37   :  { %306 = vmatprep.subr.bf16.mxu0 %v457_v0  ;;  %314 = vmatprep.mubr.msk.bf16.mxu0 %vm458_vm0, %v457_v0  ;;  %v350_v3 = vld [vmem:[#allocation7] sm:$0xff]   ;;  %v348_v4 = vld [vmem:[#allocation5 + $0x10] sm:$0xff]   ;;  %v351_v5 = vld [vmem:[#allocation7 + $0x8] sm:$0xff]   ;;  %vm101_vm1 = vcmask 523264   ;;  %s459_s7 = smov [#allocation8]  }
  0x38   :  { %318 = vmatprep.subr.bf16.mxu1 %v457_v0  ;;  %334 = vmatprep.mubr.msk.bf16.mxu1 %vm458_vm0, %v457_v0  ;;  %v349_v6 = vld [vmem:[#allocation5 + $0x18] sm:$0xff]   ;;  %v352_v7 = vld [vmem:[#allocation7 + $0x10] sm:$0xff]   ;;  %v354_v10 = vld [vmem:[#allocation7 + $0x20] sm:$0xff]   ;;  %s267_s8 = sshll.u32 %s459_s7, 4  ;;  %s268_s8 = int_to_ptr.vmem [resolvable:$true] %s267_s8 }
  0x39   :  { %307 = vmatpush3.bf16.msra.mxu0 %v346_v1  ;;  %319 = vmatpush3.bf16.msra.mxu1 %v350_v3  ;;  %v61_v8 = vld [vmem:[#allocation2] sm:$0xf]  ;;  %v355_v11 = vld [vmem:[#allocation7 + $0x28] sm:$0xff]   ;;  %v356_v12 = vld [vmem:[#allocation7 + $0x30] sm:$0xff]   ;;  %p429_p11 = scmp.lt.s32.totalorder %s268_s8, %s268_s8 }
  0x3a   :  { %308 = vmatprep.subr.bf16.mxu0 %v457_v0  ;;  %320 = vmatprep.subr.bf16.mxu1 %v457_v0  ;;  %v353_v9 = vld [vmem:[#allocation7 + $0x18] sm:$0xff]  }
  0x3b   :  { %v357_v13 = vld [vmem:[#allocation7 + $0x38] sm:$0xff]  }
  0x3c   :  { %v277_v14 = vld [vmem:[%s552_s2] ss:$0 sm:$0xff]  ;;  %s424_s2 = scalar_lea.vmem %s268_s8, 64 }
  0x3d   :  { %309 = vmatpush3.bf16.msra.mxu0 %v347_v2  ;;  %321 = vmatpush3.bf16.msra.mxu1 %v351_v5  ;;  %v283_v22 = vld [vmem:[%s554_s4] ss:$0 sm:$0xff]  ;;  %p425_p10 = scmp.ne.s32.totalorder %s268_s8, %s424_s2  ;;  %p430_p12 = scmp.lt.s32.totalorder %s424_s2, %s424_s2 }
  0x3e   :  { %310 = vmatprep.subr.bf16.mxu0 %v457_v0  ;;  %322 = vmatprep.subr.bf16.mxu1 %v457_v0 }
  0x3f   :  { %p431_p13 = por %p430_p12, %p429_p11 }
  0x41   :  { %311 = vmatpush3.bf16.msra.mxu0 %v348_v4  ;;  %323 = vmatpush3.bf16.msra.mxu1 %v352_v7  ;;  %p432_p0 = pnand %p431_p13, %p425_p10 }
  0x42   :  { %312 = vmatprep.subr.bf16.mxu0 %v457_v0  ;;  %324 = vmatprep.subr.bf16.mxu1 %v457_v0 }
  0x45   :  { %313 = vmatpush3.bf16.msra.mxu0 %v349_v6  ;;  %325 = vmatpush3.bf16.msra.mxu1 %v353_v9 }
  0x46   :  { %326 = vmatprep.subr.bf16.mxu1 %v457_v0 }
  0x48   :  { %315 = vmatmul.mubr.msk.bf16.vlgmr.msra.gmra.mrb[0].mxu0 %vm101_vm1, %v61_v8 }
  0x49   :  { %327 = vmatpush3.bf16.msra.mxu1 %v354_v10 }
  0x4a   :  { %328 = vmatprep.subr.bf16.mxu1 %v457_v0 }
  0x4d   :  { %329 = vmatpush3.bf16.msra.mxu1 %v355_v11 }
  0x4e   :  { %330 = vmatprep.subr.bf16.mxu1 %v457_v0 }
  0x51   :  { %331 = vmatpush3.bf16.msra.mxu1 %v356_v12 }
  0x52   :  { %332 = vmatprep.subr.bf16.mxu1 %v457_v0 }
  0x55   :  { %333 = vmatpush3.bf16.msra.mxu1 %v357_v13 }
 0x11b   :  { %v139_v15 = vpop.f32.mrb[0].mxu0 }
 0x11c   :  { %v140_v16 = vadd.f32 %v277_v14, %v139_v15  ;;  %v316_v17 = vpop.f32.mrb[1].mxu0 }
 0x11d   :  { %v142_v18 = vpop.f32.mrb[2].mxu0 }
 0x11e   :  { %v145_v19 = vmax.f32 %v140_v16, 0.0  ;;  %v317_v20 = vpop.f32.mrb[3].mxu0 }
 0x120   :  { %v146_v21 = vpack.c.bf16 %v145_v19, %v145_v19 }
 0x122   :  { %335 = vmatmul.mubr.bf16.vlgmr.msra.gmra.mrb[0].mxu1 %v146_v21 }
 0x1f5   :  { %v252_v23 = vpop.f32.mrb[0].mxu1 }
 0x1f6   :  { %v253_v24 = vadd.f32 %v283_v22, %v252_v23  ;;  %v336_v25 = vpop.f32.mrb[1].mxu1 }
 0x1f7   :  { %v255_v26 = vpop.f32.mrb[2].mxu1 }
 0x1f8   :  { %v258_v27 = vmax.f32 %v253_v24, 0.0  ;;  %v337_v28 = vpop.f32.mrb[3].mxu1 }
 0x1fa   :  { %v259_v29 = vpack.c.bf16 %v258_v27, %v258_v27 }
 0x1fc   :  { %260 = vst [vmem:[#allocation8] sm:$0xf] %v259_v29 }
 0x1fd   :  { %435 = shalt.err (!%p432_p0)
}
 0x1fe   :  { %s436_s10 = scalar_lea.hbm %s555_s5, 64 }
 0x1ff   :  { %p437_p1 = scmp.ne.s32.totalorder %s555_s5, %s436_s10  ;;  %p440_p2 = scmp.lt.u32.totalorder %s436_s10, %s555_s5 }
 0x201   :  { %p442_p3 = pnand %p440_p2, %p437_p1 }
 0x203   :  { %445 = shalt.err (!%p442_p3)
}
 0x204   :  { %270 = dma.vmem_to_hbm [thread:$0]  %s268_s8, 64, %s555_s5, [#allocation4]  }
 0x205   :  { %450 = dma.done.wait [#allocation4], 64  }
 0x206   :  { %451 = vsyncadd [#allocation4], 4294967232 }
 0x207   :  { %274 = vsyncpa [#allocation3], 1 }
 0x208   :  { %275 = vsyncpa [#allocation6], 1 }
 0x209   :  { %276 = vsyncpa [#allocation4], 1 }

</bundles_post_ra>
